<compile_context>
chip_gen: v7x
topology: tpu7x:2x2x1
jax: 0.10.0
libtpu: 0.0.40
codegen_flags: <defaults>
</compile_context>

<pallas_src>
import jax
import jax.numpy as jnp
from jax.experimental import pallas as pl
from jax.experimental.pallas import tpu as pltpu

EPS = 1e-5


def _basic_block_kernel(x_ref, w1_ref, w2_ref, aff_ref, out_ref):
    """One batch element per grid step.

    x_ref   : (1, H, W*C)   lane-folded NHWC input (f32); also used as the residual
    w1_ref  : (3*W*C, W*C)  banded conv1 weights (bf16): kw shifts + column zero-padding folded in
    w2_ref  : (3*W*C, W*C)  banded conv2 weights (bf16)
    aff_ref : (4, W*C)      rows: [bn1 scale, bn1 bias, bn2 scale, bn2 bias] tiled per lane
    out_ref : (1, H, W*C)
    """
    H = out_ref.shape[1]
    WC = out_ref.shape[2]
    x = x_ref[0]                                   # (H, WC) f32, lane-dense
    zrow = jnp.zeros((1, WC), jnp.float32)

    def conv3x3(a, w_ref):
        # LHS column groups are the three kh taps of the row-padded slab (zero-row concat
        # handles the top/bottom halo); the kw taps and the left/right zero-padding live
        # in the banded-block structure of w_ref, so the whole 3x3 conv is one
        # (H, 3*WC) @ (3*WC, WC) MXU dot, bf16 operands, f32 accumulation.
        up = jnp.concatenate([zrow, a[:H - 1]], axis=0)   # kh = 0 taps (row above)
        dn = jnp.concatenate([a[1:], zrow], axis=0)       # kh = 2 taps (row below)
        lhs = jnp.concatenate([up, a, dn], axis=1).astype(jnp.bfloat16)
        return jnp.dot(lhs, w_ref[...], preferred_element_type=jnp.float32)

    s1 = aff_ref[0:1, :]
    b1 = aff_ref[1:2, :]
    s2 = aff_ref[2:3, :]
    b2 = aff_ref[3:4, :]

    # conv1 -> BN1 (post-dot f32 scale/bias) -> ReLU
    y1 = jnp.maximum(conv3x3(x, w1_ref) * s1 + b1, 0.0)
    # conv2 -> BN2 -> + residual -> ReLU
    y2 = conv3x3(y1, w2_ref) * s2 + b2 + x
    out_ref[0] = jnp.maximum(y2, 0.0).astype(out_ref.dtype)


def _banded_conv_weights(w_oihw, width):
    """Fold a 3x3 OIHW conv kernel into a (3*width*I, width*O) banded-block matrix.

    Row index = kh*(width*I) + w_in*I + i   (matches the lane-folded LHS layout)
    Col index = w_out*O + o
    Block (w_in, w_out) holds w[:, :, kh, kw] with kw = w_in - w_out + 1; out-of-range kw
    (i.e. the left/right zero-padding columns) are zero blocks.
    """
    O, I, KH, KW = w_oihw.shape
    wt = jnp.transpose(w_oihw, (2, 3, 1, 0))                         # (kh, kw, i, o)
    kw_idx = jnp.arange(width)[:, None] - jnp.arange(width)[None, :] + 1
    valid = ((kw_idx >= 0) & (kw_idx < KW)).astype(wt.dtype)
    banded = wt[:, jnp.clip(kw_idx, 0, KW - 1)]                      # (kh, w_in, w_out, i, o)
    banded = banded * valid[None, :, :, None, None]
    banded = jnp.transpose(banded, (0, 1, 3, 2, 4))                  # (kh, w_in, i, w_out, o)
    return banded.reshape(KH * width * I, width * O).astype(jnp.bfloat16)


@jax.jit
def basic_block_forward(x_nchw, w1, w2,
                        g1, beta1, m1, v1,
                        g2, beta2, m2, v2):
    """x_nchw: (N, C, H, W) float32. Conv weights in PyTorch OIHW layout."""
    N, Cin, H, W = x_nchw.shape
    Cout = w1.shape[0]
    assert Cin == Cout, "BasicBlock with downsample=None requires inplanes == planes"
    WC = W * Cout

    # Single input stream: NCHW -> lane-folded (N, H, W*C). No wrapper-side padding and
    # no separate residual copy (the kernel reuses the same VMEM block for the residual).
    x_folded = jnp.transpose(x_nchw, (0, 2, 3, 1)).reshape(N, H, W * Cin)

    # Eval-mode BN: per-output-channel scale/bias, applied post-dot in f32 inside the
    # kernel, tiled across the folded lane dim (lane index = w*Cout + o).
    s1 = g1 * jax.lax.rsqrt(v1 + EPS)
    s2 = g2 * jax.lax.rsqrt(v2 + EPS)
    aff = jnp.stack([jnp.tile(s1, W), jnp.tile(beta1 - m1 * s1, W),
                     jnp.tile(s2, W), jnp.tile(beta2 - m2 * s2, W)]).astype(jnp.float32)

    w1_banded = _banded_conv_weights(w1, W)      # (3*WC, WC) bf16
    w2_banded = _banded_conv_weights(w2, W)      # (3*WC, WC) bf16

    # VMEM budget from actual double-buffered tile sizes (+headroom), capped for v7x.
    tile_bytes = (2 * (H * WC * 4)              # input block, double buffered
                  + 2 * (H * WC * 4)            # output block, double buffered
                  + 2 * 2 * (3 * WC * WC * 2)   # two grid-invariant weight mats, bf16
                  + 2 * (4 * WC * 4))           # affine rows
    vmem_limit = int(min(max(4 * tile_bytes, 8 * 1024 * 1024), 48 * 1024 * 1024))

    out_folded = pl.pallas_call(
        _basic_block_kernel,
        out_shape=jax.ShapeDtypeStruct((N, H, WC), jnp.float32),
        grid_spec=pltpu.PrefetchScalarGridSpec(
            num_scalar_prefetch=0,
            grid=(N,),
            in_specs=[
                pl.BlockSpec((1, H, WC), lambda n: (n, 0, 0)),
                pl.BlockSpec((3 * WC, WC), lambda n: (0, 0)),   # grid-invariant weights
                pl.BlockSpec((3 * WC, WC), lambda n: (0, 0)),
                pl.BlockSpec((4, WC), lambda n: (0, 0)),
            ],
            out_specs=pl.BlockSpec((1, H, WC), lambda n: (n, 0, 0)),
        ),
        compiler_params=pltpu.CompilerParams(
            dimension_semantics=("parallel",),
            vmem_limit_bytes=vmem_limit),
    )(x_folded, w1_banded, w2_banded, aff)

    # Back to the PyTorch module's NCHW output convention.
    return jnp.transpose(out_folded.reshape(N, H, W, Cout), (0, 3, 1, 2))


def _reference_forward(x_nchw, w1, w2, g1, beta1, m1, v1, g2, beta2, m2, v2):
    def conv(x, w):
        return jax.lax.conv_general_dilated(
            x, w, window_strides=(1, 1), padding=((1, 1), (1, 1)),
            dimension_numbers=("NCHW", "OIHW", "NCHW"))

    def bn(x, g, b, m, v):
        inv = g / jnp.sqrt(v + EPS)
        return x * inv[None, :, None, None] + (b - m * inv)[None, :, None, None]

    out = jax.nn.relu(bn(conv(x_nchw, w1), g1, beta1, m1, v1))
    out = bn(conv(out, w2), g2, beta2, m2, v2)
    return jax.nn.relu(out + x_nchw)


if __name__ == "__main__":
    N, C, H, W = 2, 8, 16, 16  # inplanes == planes == 8, stride=1, dilation=1, no downsample
    key = jax.random.PRNGKey(0)
    keys = jax.random.split(key, 8)

    x = jax.random.normal(keys[0], (N, C, H, W), dtype=jnp.float32)

    # conv weights (PyTorch OIHW layout)
    w1 = 0.1 * jax.random.normal(keys[1], (C, C, 3, 3), dtype=jnp.float32)
    w2 = 0.1 * jax.random.normal(keys[2], (C, C, 3, 3), dtype=jnp.float32)

    # BatchNorm parameters / running stats (inference-mode BN)
    g1 = 1.0 + 0.1 * jax.random.normal(keys[3], (C,), dtype=jnp.float32)
    beta1 = 0.1 * jax.random.normal(keys[4], (C,), dtype=jnp.float32)
    m1 = 0.05 * jax.random.normal(keys[5], (C,), dtype=jnp.float32)
    v1 = jnp.abs(0.1 * jax.random.normal(keys[6], (C,), dtype=jnp.float32)) + 0.9
    g2 = jnp.ones((C,), jnp.float32)
    beta2 = jnp.zeros((C,), jnp.float32)
    m2 = jnp.zeros((C,), jnp.float32)
    v2 = jnp.ones((C,), jnp.float32)

    out = basic_block_forward(x, w1, w2, g1, beta1, m1, v1, g2, beta2, m2, v2)
    out = jax.block_until_ready(out)

    ref = _reference_forward(x, w1, w2, g1, beta1, m1, v1, g2, beta2, m2, v2)
    ref = jax.block_until_ready(ref)

    assert out.shape == (N, C, H, W), out.shape
    max_err = float(jnp.max(jnp.abs(out - ref)))
    # bf16 MXU operands with f32 accumulation (BN applied in f32) -> loose tolerance.
    assert jnp.allclose(out, ref, atol=5e-2, rtol=5e-2), max_err
    print("KERNEL_OK")
</pallas_src>

<mosaic_0001>
module attributes {stable_mosaic.version = 11 : i64} {
  func.func @_basic_block_kernel(%arg0: i32, %arg1: memref<1x16x128xf32, #tpu.memory_space<vmem>>, %arg2: memref<384x128xbf16, #tpu.memory_space<vmem>>, %arg3: memref<384x128xbf16, #tpu.memory_space<vmem>>, %arg4: memref<4x128xf32, #tpu.memory_space<vmem>>, %arg5: memref<1x16x128xf32, #tpu.memory_space<vmem>>) attributes {dimension_semantics = [#tpu.dimension_semantics<parallel>], iteration_bounds = array<i64: 2>, scalar_prefetch = 0 : i64, scratch_operands = 0 : i64, tpu.core_type = #tpu.core_type<tc>, window_params = [{transform_indices = @transform_0, window_bounds = array<i64: 1, 16, 128>}, {pipeline_mode = #tpu.pipeline_mode<synchronous>, transform_indices = @transform_1, window_bounds = array<i64: 384, 128>}, {pipeline_mode = #tpu.pipeline_mode<synchronous>, transform_indices = @transform_2, window_bounds = array<i64: 384, 128>}, {pipeline_mode = #tpu.pipeline_mode<synchronous>, transform_indices = @transform_3, window_bounds = array<i64: 4, 128>}, {transform_indices = @transform_4, window_bounds = array<i64: 1, 16, 128>}]} {
    %c0 = arith.constant 0 : index
    %c0_0 = arith.constant 0 : index
    %c0_1 = arith.constant 0 : index
    %0 = vector.load %arg1[%c0, %c0_0, %c0_1] : memref<1x16x128xf32, #tpu.memory_space<vmem>>, vector<1x16x128xf32>
    %1 = vector.shape_cast %0 : vector<1x16x128xf32> to vector<16x128xf32>
    %cst = arith.constant 0.000000e+00 : f32
    %2 = vector.broadcast %cst : f32 to vector<1x128xf32>
    %c0_2 = arith.constant 0 : index
    %c0_3 = arith.constant 0 : index
    %3 = vector.load %arg4[%c0_2, %c0_3] : memref<4x128xf32, #tpu.memory_space<vmem>>, vector<1x128xf32>
    %c1 = arith.constant 1 : index
    %c0_4 = arith.constant 0 : index
    %4 = vector.load %arg4[%c1, %c0_4] : memref<4x128xf32, #tpu.memory_space<vmem>>, vector<1x128xf32>
    %c2 = arith.constant 2 : index
    %c0_5 = arith.constant 0 : index
    %5 = vector.load %arg4[%c2, %c0_5] : memref<4x128xf32, #tpu.memory_space<vmem>>, vector<1x128xf32>
    %c3 = arith.constant 3 : index
    %c0_6 = arith.constant 0 : index
    %6 = vector.load %arg4[%c3, %c0_6] : memref<4x128xf32, #tpu.memory_space<vmem>>, vector<1x128xf32>
    %7 = vector.extract_strided_slice %1 {offsets = [0, 0], sizes = [15, 128], strides = [1, 1]} : vector<16x128xf32> to vector<15x128xf32>
    %8 = tpu.concatenate %2, %7 in 0 : vector<1x128xf32>, vector<15x128xf32> -> vector<16x128xf32>
    %9 = vector.extract_strided_slice %1 {offsets = [1, 0], sizes = [15, 128], strides = [1, 1]} : vector<16x128xf32> to vector<15x128xf32>
    %10 = tpu.concatenate %9, %2 in 0 : vector<15x128xf32>, vector<1x128xf32> -> vector<16x128xf32>
    %11 = tpu.concatenate %8, %1, %10 in 1 : vector<16x128xf32>, vector<16x128xf32>, vector<16x128xf32> -> vector<16x384xf32>
    %12 = arith.truncf %11 : vector<16x384xf32> to vector<16x384xbf16>
    %c0_7 = arith.constant 0 : index
    %c0_8 = arith.constant 0 : index
    %13 = vector.load %arg2[%c0_7, %c0_8] : memref<384x128xbf16, #tpu.memory_space<vmem>>, vector<384x128xbf16>
    %cst_9 = arith.constant dense<0.000000e+00> : vector<16x128xf32>
    %14 = tpu.matmul %12, %13, %cst_9 {dimension_numbers = #tpu.dot_dimension_numbers<[1], [0], [0], [1], [0, 0, 1, 1], [], []>} : vector<16x384xbf16>, vector<384x128xbf16>, vector<16x128xf32> -> vector<16x128xf32>
    %15 = vector.broadcast %3 : vector<1x128xf32> to vector<16x128xf32>
    %16 = arith.mulf %14, %15 : vector<16x128xf32>
    %17 = vector.broadcast %4 : vector<1x128xf32> to vector<16x128xf32>
    %18 = arith.addf %16, %17 : vector<16x128xf32>
    %cst_10 = arith.constant 0.000000e+00 : f32
    %19 = vector.broadcast %cst_10 : f32 to vector<16x128xf32>
    %20 = arith.maximumf %18, %19 : vector<16x128xf32>
    %21 = vector.extract_strided_slice %20 {offsets = [0, 0], sizes = [15, 128], strides = [1, 1]} : vector<16x128xf32> to vector<15x128xf32>
    %22 = tpu.concatenate %2, %21 in 0 : vector<1x128xf32>, vector<15x128xf32> -> vector<16x128xf32>
    %23 = vector.extract_strided_slice %20 {offsets = [1, 0], sizes = [15, 128], strides = [1, 1]} : vector<16x128xf32> to vector<15x128xf32>
    %24 = tpu.concatenate %23, %2 in 0 : vector<15x128xf32>, vector<1x128xf32> -> vector<16x128xf32>
    %25 = tpu.concatenate %22, %20, %24 in 1 : vector<16x128xf32>, vector<16x128xf32>, vector<16x128xf32> -> vector<16x384xf32>
    %26 = arith.truncf %25 : vector<16x384xf32> to vector<16x384xbf16>
    %c0_11 = arith.constant 0 : index
    %c0_12 = arith.constant 0 : index
    %27 = vector.load %arg3[%c0_11, %c0_12] : memref<384x128xbf16, #tpu.memory_space<vmem>>, vector<384x128xbf16>
    %cst_13 = arith.constant dense<0.000000e+00> : vector<16x128xf32>
    %28 = tpu.matmul %26, %27, %cst_13 {dimension_numbers = #tpu.dot_dimension_numbers<[1], [0], [0], [1], [0, 0, 1, 1], [], []>} : vector<16x384xbf16>, vector<384x128xbf16>, vector<16x128xf32> -> vector<16x128xf32>
    %29 = vector.broadcast %5 : vector<1x128xf32> to vector<16x128xf32>
    %30 = arith.mulf %28, %29 : vector<16x128xf32>
    %31 = vector.broadcast %6 : vector<1x128xf32> to vector<16x128xf32>
    %32 = arith.addf %30, %31 : vector<16x128xf32>
    %33 = arith.addf %32, %1 : vector<16x128xf32>
    %cst_14 = arith.constant 0.000000e+00 : f32
    %34 = vector.broadcast %cst_14 : f32 to vector<16x128xf32>
    %35 = arith.maximumf %33, %34 : vector<16x128xf32>
    %c0_15 = arith.constant 0 : index
    %c0_16 = arith.constant 0 : index
    %c0_17 = arith.constant 0 : index
    %36 = vector.load %arg5[%c0_15, %c0_16, %c0_17] : memref<1x16x128xf32, #tpu.memory_space<vmem>>, vector<1x16x128xf32>
    %37 = vector.shape_cast %36 : vector<1x16x128xf32> to vector<16x128xf32>
    %38 = vector.shape_cast %35 : vector<16x128xf32> to vector<1x16x128xf32>
    tpu.vector_store %arg5[%c0_15, %c0_16, %c0_17], %38 {strides = array<i32>} : memref<1x16x128xf32, #tpu.memory_space<vmem>>, vector<1x16x128xf32>,
    return
  }
  func.func @transform_0(%arg0: i32) -> (i32, i32, i32) {
    %c0_i32 = arith.constant 0 : i32
    %c0_i32_0 = arith.constant 0 : i32
    %c0_i32_1 = arith.constant 0 : i32
    return %arg0, %c0_i32, %c0_i32_0 : i32, i32, i32
  }
  func.func @transform_1(%arg0: i32) -> (i32, i32) {
    %c0_i32 = arith.constant 0 : i32
    %c0_i32_0 = arith.constant 0 : i32
    %c0_i32_1 = arith.constant 0 : i32
    return %c0_i32, %c0_i32_0 : i32, i32
  }
  func.func @transform_2(%arg0: i32) -> (i32, i32) {
    %c0_i32 = arith.constant 0 : i32
    %c0_i32_0 = arith.constant 0 : i32
    %c0_i32_1 = arith.constant 0 : i32
    return %c0_i32, %c0_i32_0 : i32, i32
  }
  func.func @transform_3(%arg0: i32) -> (i32, i32) {
    %c0_i32 = arith.constant 0 : i32
    %c0_i32_0 = arith.constant 0 : i32
    %c0_i32_1 = arith.constant 0 : i32
    return %c0_i32, %c0_i32_0 : i32, i32
  }
  func.func @transform_4(%arg0: i32) -> (i32, i32, i32) {
    %c0_i32 = arith.constant 0 : i32
    %c0_i32_0 = arith.constant 0 : i32
    %c0_i32_1 = arith.constant 0 : i32
    return %arg0, %c0_i32, %c0_i32_0 : i32, i32, i32
  }
}

</mosaic_0001>

<bundles_post_ra>
// kernel: tile.23
= control target key start
LH: loop header
LB: loop body
LE: loop exit
PB: predicated region body
PF: predicated region fallthrough
CT: control target
= control target key end

     0   :  { %s28_s0 = inlined_call_operand.vmem [shape: f32[8], index: 0, kind: input, shape index: {}]   ;;  %s29_s1 = inlined_call_operand.vmem [shape: f32[16,8], index: 1, kind: output, shape index: {}]  }
   0x1   :  { %v4_v0 = vld [vmem:[%s28_s0] ss:$0 sm:$0xff] }
   0x2   :  { %5 = vst [vmem:[%s29_s1] sm:$0xff] %v4_v0  ;;  %8 = vst [vmem:[%s29_s1 + $0x8] sm:$0xff] %v4_v0 }

// kernel: tile.36
= control target key start
LH: loop header
LB: loop body
LE: loop exit
PB: predicated region body
PF: predicated region fallthrough
CT: control target
= control target key end

     0   :  { %s131_s10 = smov 120   ;;  %s132_s11 = smov 104   ;;  %vm3_vm0 = vcmask 64512   ;;  %vm9_vm1 = vcmask 1048512   ;;  %vm15_vm2 = vcmask 982912   ;;  %vm21_vm3 = vcmask 917312   ;;  %s207_s0 = inlined_call_operand.vmem [shape: f32[16,8], index: 0, kind: input, shape index: {}]   ;;  %s208_s1 = inlined_call_operand.vmem [shape: f32[1,128], index: 1, kind: output, shape index: {}]  }
   0x1   :  { %v101_v0 = vld [vmem:[%s207_s0 + $0xf] sm:$0x1]   ;;  %v103_v1 = vld [vmem:[%s207_s0 + $0xd] sm:$0x1]   ;;  %v102_v2 = vld [vmem:[%s207_s0 + $0xe] sm:$0x1]  }
   0x2   :  { %7 = vrot.lane.b32.xlu0 %v101_v0, %s131_s10  ;;  %19 = vrot.lane.b32.xlu1 %v103_v1, %s132_s11  ;;  %v104_v3 = vld [vmem:[%s207_s0 + $0xc] sm:$0x1]   ;;  %s133_s16 = smov 112   ;;  %s134_s17 = smov 96   ;;  %v105_v4 = vld [vmem:[%s207_s0 + $0xb] sm:$0x1]  }
   0x3   :  { %v106_v5 = vld [vmem:[%s207_s0 + $0xa] sm:$0x1]   ;;  %v2_v6 = vld [vmem:[%s207_s0] sm:$0x1]   ;;  %s135_s24 = smov 88   ;;  %s136_s25 = smov 80  }
   0x4   :  { %4 = vst.msk [vmem:[#allocation0] sm:$0x1] %vm3_vm0, %v2_v6   ;;  %v107_v7 = vld [vmem:[%s207_s0 + $0x9] sm:$0x1]   ;;  %v108_v8 = vld [vmem:[%s207_s0 + $0x8] sm:$0x1]  }
   0x5   :  { %s137_s30 = smov 72   ;;  %s138_s2 = smov 64   ;;  %v109_v9 = vld [vmem:[%s207_s0 + $0x7] sm:$0x1]   ;;  %v110_v10 = vld [vmem:[%s207_s0 + $0x6] sm:$0x1]  }
   0x6   :  { %13 = vrot.lane.b32.xlu0 %v102_v2, %s133_s16  ;;  %25 = vrot.lane.b32.xlu1 %v104_v3, %s134_s17  ;;  %s139_s7 = smov 56   ;;  %s140_s8 = smov 48   ;;  %v111_v11 = vld [vmem:[%s207_s0 + $0x5] sm:$0x1]   ;;  %v112_v12 = vld [vmem:[%s207_s0 + $0x4] sm:$0x1]  }
   0x7   :  { %s141_s13 = smov 40   ;;  %s142_s14 = smov 32   ;;  %v113_v13 = vld [vmem:[%s207_s0 + $0x3] sm:$0x1]   ;;  %v114_v14 = vld [vmem:[%s207_s0 + $0x2] sm:$0x1]  }
   0x8   :  { %s143_s19 = smov 24   ;;  %s144_s20 = smov 16   ;;  %v115_v15 = vld [vmem:[%s207_s0 + $0x1] sm:$0x1]   ;;  %vm27_vm4 = vcmask 851712   ;;  %vm33_vm5 = vcmask 786112  }
   0x9   :  { %s145_s0 = smov 8   ;;  %vm39_vm6 = vcmask 720512   ;;  %vm45_vm7 = vcmask 654912   ;;  %vm51_vm8 = vcmask 589312   ;;  %vm57_vm9 = vcmask 523712  }
   0xa   :  { %31 = vrot.lane.b32.xlu0 %v105_v4, %s135_s24  ;;  %37 = vrot.lane.b32.xlu1 %v106_v5, %s136_s25  ;;  %vm63_vm10 = vcmask 458112   ;;  %vm69_vm11 = vcmask 392512   ;;  %vm75_vm12 = vcmask 326912   ;;  %vm81_vm13 = vcmask 261312  }
   0xb   :  { %vm87_vm14 = vcmask 195712   ;;  %vm93_vm15 = vcmask 130112  }
   0xe   :  { %43 = vrot.lane.b32.xlu0 %v107_v7, %s137_s30  ;;  %49 = vrot.lane.b32.xlu1 %v108_v8, %s138_s2 }
  0x12   :  { %55 = vrot.lane.b32.xlu0 %v109_v9, %s139_s7  ;;  %61 = vrot.lane.b32.xlu1 %v110_v10, %s140_s8 }
  0x16   :  { %67 = vrot.lane.b32.xlu0 %v111_v11, %s141_s13  ;;  %73 = vrot.lane.b32.xlu1 %v112_v12, %s142_s14 }
  0x1a   :  { %79 = vrot.lane.b32.xlu0 %v113_v13, %s143_s19  ;;  %85 = vrot.lane.b32.xlu1 %v114_v14, %s144_s20 }
  0x1e   :  { %91 = vrot.lane.b32.xlu0 %v115_v15, %s145_s0 }
  0x74   :  { %v8_v16 = vpop.permute.xlu0 %7   ;;  %v20_v17 = vpop.permute.xlu1 %19  }
  0x75   :  { %10 = vst.msk [vmem:[#allocation0] sm:$0x1] %vm9_vm1, %v8_v16  }
  0x78   :  { %v14_v18 = vpop.permute.xlu0 %13   ;;  %v26_v19 = vpop.permute.xlu1 %25  }
  0x79   :  { %16 = vst.msk [vmem:[#allocation0] sm:$0x1] %vm15_vm2, %v14_v18  }
  0x7a   :  { %22 = vst.msk [vmem:[#allocation0] sm:$0x1] %vm21_vm3, %v20_v17  }
  0x7b   :  { %28 = vst.msk [vmem:[#allocation0] sm:$0x1] %vm27_vm4, %v26_v19  }
  0x7c   :  { %v32_v20 = vpop.permute.xlu0 %31   ;;  %v38_v21 = vpop.permute.xlu1 %37  }
  0x7d   :  { %34 = vst.msk [vmem:[#allocation0] sm:$0x1] %vm33_vm5, %v32_v20  }
  0x7e   :  { %40 = vst.msk [vmem:[#allocation0] sm:$0x1] %vm39_vm6, %v38_v21  }
  0x80   :  { %v44_v22 = vpop.permute.xlu0 %43   ;;  %v50_v23 = vpop.permute.xlu1 %49  }
  0x81   :  { %46 = vst.msk [vmem:[#allocation0] sm:$0x1] %vm45_vm7, %v44_v22  }
  0x82   :  { %52 = vst.msk [vmem:[#allocation0] sm:$0x1] %vm51_vm8, %v50_v23  }
  0x84   :  { %v56_v24 = vpop.permute.xlu0 %55   ;;  %v62_v25 = vpop.permute.xlu1 %61  }
  0x85   :  { %58 = vst.msk [vmem:[#allocation0] sm:$0x1] %vm57_vm9, %v56_v24  }
  0x86   :  { %64 = vst.msk [vmem:[#allocation0] sm:$0x1] %vm63_vm10, %v62_v25  }
  0x88   :  { %v68_v26 = vpop.permute.xlu0 %67   ;;  %v74_v27 = vpop.permute.xlu1 %73  }
  0x89   :  { %70 = vst.msk [vmem:[#allocation0] sm:$0x1] %vm69_vm11, %v68_v26  }
  0x8a   :  { %76 = vst.msk [vmem:[#allocation0] sm:$0x1] %vm75_vm12, %v74_v27  }
  0x8c   :  { %v80_v28 = vpop.permute.xlu0 %79   ;;  %v86_v29 = vpop.permute.xlu1 %85  }
  0x8d   :  { %82 = vst.msk [vmem:[#allocation0] sm:$0x1] %vm81_vm13, %v80_v28  }
  0x8e   :  { %88 = vst.msk [vmem:[#allocation0] sm:$0x1] %vm87_vm14, %v86_v29  }
  0x90   :  { %v92_v30 = vpop.permute.xlu0 %91  }
  0x91   :  { %94 = vst.msk [vmem:[#allocation0] sm:$0x1] %vm93_vm15, %v92_v30  }
  0x98   :  { %v98_v31 = vld [vmem:[#allocation0] sm:$0x1] }
  0x99   :  { %100 = vst [vmem:[%s208_s1] sm:$0x1] %v98_v31 }

// kernel: basic_block_forward.1
= control target key start
LH: loop header
LB: loop body
LE: loop exit
PB: predicated region body
PF: predicated region fallthrough
CT: control target
= control target key end

     0   :  { %s1152_s15 = smov 0   ;;  %s1390_s0 = inlined_call_operand.vmem [shape: f32[2,16,128], index: 0, kind: input, shape index: {}]   ;;  %s1391_s1 = inlined_call_operand.vmem [shape: bf16[384,128], index: 1, kind: input, shape index: {}]   ;;  %s1392_s2 = inlined_call_operand.vmem [shape: bf16[384,128], index: 2, kind: input, shape index: {}]   ;;  %s1393_s3 = inlined_call_operand.vmem [shape: f32[4,128], index: 3, kind: input, shape index: {}]   ;;  %s1394_s4 = inlined_call_operand.vmem [shape: f32[2,16,128], index: 4, kind: output, shape index: {}]  }
   0x1 LB: > { %s876_s16 = sadd.s32 4294967295, %s1122_s15   ;;  %p880_p0 = scmp.ge.s32.totalorder %s1122_s15, 1  ;;  %s1122_s15 = sphi %s1152_s15, %s14_s15  }
   0x2   : > { %p162_p1 = scmp.lt.s32.totalorder %s1122_s15, 3 }
   0x4   : > { %p163_p2 = pnand %p880_p0, %p162_p1 }
   0x5   : > { %v1068_v0 = vld [vmem:[%s1391_s1 + $0x40] sm:$0xff] (!%p163_p2)   ;;  %v1124_v1 = vmov (!%p163_p2), 0.0   ;;  %v1071_v4 = vld [vmem:[%s1391_s1 + $0x48] sm:$0xff] (!%p163_p2)   ;;  %vm1125_vm0 = vmmov (!%p163_p2), 0   ;;  %v1074_v7 = vld [vmem:[%s1391_s1 + $0x50] sm:$0xff] (!%p163_p2)   ;;  %p188_p3 = scmp.lt.s32.totalorder (!%p163_p2), %s876_s16, 1 }
   0x6   : > { %166 = sbr.rel (%p163_p2) target bundleno = 496 (0x1f0), region = 36  ;;  %1017 = vmatprep.subr.bf16.mxu1 (!%p163_p2), %v1124_v1  ;;  %v1069_v2 = vld [vmem:[%s1391_s1] sm:$0xff] (!%p163_p2)   ;;  %955 = vmatprep.subr.bf16.mxu0 (!%p163_p2), %v1068_v0  ;;  %v1072_v5 = vld [vmem:[%s1391_s1 + $0x8] sm:$0xff] (!%p163_p2)   ;;  %v1075_v8 = vld [vmem:[%s1391_s1 + $0x10] sm:$0xff] (!%p163_p2)   ;;  %vm207_vm1 = vcmask (!%p163_p2), 1040384   ;;  %vm214_vm3 = vcmask (!%p163_p2), 1046528  }
   0x7   : > { %v1070_v3 = vld [vmem:[%s1391_s1 + $0x80] sm:$0xff] (!%p163_p2)   ;;  %956 = vmatpush3.bf16.msra.mxu0 (!%p163_p2), %v1069_v2  ;;  %1033 = vmatprep.mubr.msk.bf16.mxu1 (!%p163_p2), %vm1125_vm0, %v1124_v1  ;;  %v1073_v6 = vld [vmem:[%s1391_s1 + $0x88] sm:$0xff] (!%p163_p2)   ;;  %v1076_v9 = vld [vmem:[%s1391_s1 + $0x90] sm:$0xff] (!%p163_p2)   ;;  %vm1126_vm4 = vmmov (!%p163_p2), 1  }
   0x8   : > { %1018 = vmatpush3.bf16.msra.mxu1 (!%p163_p2), %v1070_v3  ;;  %957 = vmatprep.subr.bf16.mxu0 (!%p163_p2), %v1071_v4  ;;  %v1077_v10 = vld [vmem:[%s1391_s1 + $0x58] sm:$0xff] (!%p163_p2)   ;;  %v1080_v13 = vld [vmem:[%s1391_s1 + $0x60] sm:$0xff] (!%p163_p2)   ;;  %v1083_v16 = vld [vmem:[%s1391_s1 + $0x68] sm:$0xff] (!%p163_p2)  }
   0x9   : > { %1019 = vmatprep.subr.bf16.mxu1 (!%p163_p2), %v1124_v1  ;;  %v1078_v11 = vld [vmem:[%s1391_s1 + $0x18] sm:$0xff] (!%p163_p2)   ;;  %v1081_v14 = vld [vmem:[%s1391_s1 + $0x20] sm:$0xff] (!%p163_p2)   ;;  %v1084_v17 = vld [vmem:[%s1391_s1 + $0x28] sm:$0xff] (!%p163_p2)  }
   0xa   : > { %v1079_v12 = vld [vmem:[%s1391_s1 + $0x98] sm:$0xff] (!%p163_p2)   ;;  %v1082_v15 = vld [vmem:[%s1391_s1 + $0xa0] sm:$0xff] (!%p163_p2)   ;;  %v1085_v18 = vld [vmem:[%s1391_s1 + $0xa8] sm:$0xff] (!%p163_p2)  }
   0xb   : > { %958 = vmatpush3.bf16.msra.mxu0 (!%p163_p2), %v1072_v5  ;;  %v1086_v19 = vld [vmem:[%s1391_s1 + $0x70] sm:$0xff] (!%p163_p2)   ;;  %v1089_v22 = vld [vmem:[%s1391_s1 + $0x78] sm:$0xff] (!%p163_p2)   ;;  %vm909_vm2 = vmneg (!%p163_p2), %vm207_vm1 }
   0xc   : > { %1020 = vmatpush3.bf16.msra.mxu1 (!%p163_p2), %v1073_v6  ;;  %959 = vmatprep.subr.bf16.mxu0 (!%p163_p2), %v1074_v7  ;;  %v1087_v20 = vld [vmem:[%s1391_s1 + $0x30] sm:$0xff] (!%p163_p2)   ;;  %v1090_v29 = vld [vmem:[%s1391_s1 + $0x38] sm:$0xff] (!%p163_p2)   ;;  %vm1265_vm5 = vmpackc.low (!%p163_p2), %vm1126_vm4, %vm909_vm2 }
   0xd   : > { %1021 = vmatprep.subr.bf16.mxu1 %v1124_v1  ;;  %s1400_s16 = smov (!%p188_p3, %s876_s16), 1  ;;  %v1088_v21 = vld [vmem:[%s1391_s1 + $0xb0] sm:$0xff]   ;;  %v1091_v30 = vld [vmem:[%s1391_s1 + $0xb8] sm:$0xff]   ;;  %v1092_v35 = vld [vmem:[%s1392_s2 + $0x40] sm:$0xff]  }
   0xe   : > { %s953_s27 = sshll.u32 %s1400_s16, 4  ;;  %vm1275_vm6 = vmpackc.low %vm214_vm3, %vm1126_vm4  ;;  %v1093_v38 = vld [vmem:[%s1392_s2] sm:$0xff]   ;;  %v1095_v41 = vld [vmem:[%s1392_s2 + $0x48] sm:$0xff]  }
   0xf   : > { %960 = vmatpush3.bf16.msra.mxu0 %v1075_v8  ;;  %s192_s10 = scalar_lea.vmem %s1390_s0, %s953_s27  ;;  %v1094_v40 = vld [vmem:[%s1392_s2 + $0x80] sm:$0xff]   ;;  %v1096_v42 = vld [vmem:[%s1392_s2 + $0x8] sm:$0xff]   ;;  %v1098_v44 = vld [vmem:[%s1392_s2 + $0x50] sm:$0xff]   ;;  %s197_s8 = scalar_lea.vmem %s1394_s4, %s953_s27 }
  0x10   : > { %1022 = vmatpush3.bf16.msra.mxu1 %v1076_v9  ;;  %961 = vmatprep.subr.bf16.mxu0 %v1077_v10  ;;  %v1246_v23 = vld [vmem:[%s192_s10] sm:$0xff]  ;;  %v1248_v24 = vld [vmem:[%s192_s10 + $0x8] sm:$0xff]  ;;  %v1099_v45 = vld [vmem:[%s1392_s2 + $0x10] sm:$0xff]  }
  0x11   : > { %1023 = vmatprep.subr.bf16.mxu1 %v1124_v1  ;;  %v208_v25 = vrot.slane %v1246_v23, 7  ;;  %v209_v26 = vrot.slane %v1248_v24, 7  ;;  %v215_v27 = vrot.slane %v1246_v23, 1  ;;  %v216_v28 = vrot.slane %v1248_v24, 1  ;;  %v1097_v43 = vld [vmem:[%s1392_s2 + $0x88] sm:$0xff]   ;;  %v1100_v46 = vld [vmem:[%s1392_s2 + $0x90] sm:$0xff]  }
  0x12   : > { %v222_v31 = vpack.c.bf16 %v1248_v24, %v1246_v23  ;;  %v1101_v47 = vld [vmem:[%s1392_s2 + $0x58] sm:$0xff]   ;;  %v1104_v50 = vld [vmem:[%s1392_s2 + $0x60] sm:$0xff]   ;;  %v1107_v53 = vld [vmem:[%s1392_s2 + $0x68] sm:$0xff]  }
  0x13   : > { %962 = vmatpush3.bf16.msra.mxu0 %v1078_v11  ;;  %v210_v32 = vsel %vm207_vm1, %v208_v25, %v209_v26  ;;  %v217_v34 = vsel %vm214_vm3, %v215_v27, %v216_v28  ;;  %v1102_v48 = vld [vmem:[%s1392_s2 + $0x18] sm:$0xff]   ;;  %v1105_v51 = vld [vmem:[%s1392_s2 + $0x20] sm:$0xff]   ;;  %v1108_v54 = vld [vmem:[%s1392_s2 + $0x28] sm:$0xff]  }
  0x14   : > { %1024 = vmatpush3.bf16.msra.mxu1 %v1079_v12  ;;  %963 = vmatprep.subr.bf16.mxu0 %v1080_v13  ;;  %v911_v37 = vpack.c.bf16 %v210_v32, %v208_v25  ;;  %v914_v39 = vpack.c.bf16 %v216_v28, %v217_v34  ;;  %v1103_v49 = vld [vmem:[%s1392_s2 + $0x98] sm:$0xff]   ;;  %v1106_v52 = vld [vmem:[%s1392_s2 + $0xa0] sm:$0xff]   ;;  %v1109_v55 = vld [vmem:[%s1392_s2 + $0xa8] sm:$0xff]  }
  0x15   : > { %1025 = vmatprep.subr.bf16.mxu1 %v1124_v1  ;;  %448 = vmatprep.mubr.bf16.mxu0 %v222_v31  ;;  %v1110_v56 = vld [vmem:[%s1392_s2 + $0x70] sm:$0xff]   ;;  %v1113_v59 = vld [vmem:[%s1392_s2 + $0x78] sm:$0xff]   ;;  %v917_v10 = vld [vmem:[%s1393_s3 + $0x1] ss:$0 sm:$0xff] }
  0x16   : > { %v1111_v57 = vld [vmem:[%s1392_s2 + $0x30] sm:$0xff]   ;;  %v1114_v60 = vld [vmem:[%s1392_s2 + $0x38] sm:$0xff]   ;;  %v950_v36 = vld [vmem:[%s1393_s3 + $0x3] ss:$0 sm:$0xff] }
  0x17   : > { %964 = vmatpush3.bf16.msra.mxu0 %v1081_v14  ;;  %v1112_v58 = vld [vmem:[%s1392_s2 + $0xb0] sm:$0xff]   ;;  %v1115_v61 = vld [vmem:[%s1392_s2 + $0xb8] sm:$0xff]  }
  0x18   : > { %1026 = vmatpush3.bf16.msra.mxu1 %v1082_v15  ;;  %965 = vmatprep.subr.bf16.mxu0 %v1083_v16 }
  0x19   : > { %1027 = vmatprep.subr.bf16.mxu1 %v1124_v1 }
  0x1b   : > { %966 = vmatpush3.bf16.msra.mxu0 %v1084_v17 }
  0x1c   : > { %1028 = vmatpush3.bf16.msra.mxu1 %v1085_v18  ;;  %967 = vmatprep.subr.bf16.mxu0 %v1086_v19 }
  0x1d   : > { %1029 = vmatprep.subr.bf16.mxu1 %v1124_v1 }
  0x1f   : > { %968 = vmatpush3.bf16.msra.mxu0 %v1087_v20 }
  0x20   : > { %1030 = vmatpush3.bf16.msra.mxu1 %v1088_v21  ;;  %969 = vmatprep.subr.bf16.mxu0 %v1089_v22 }
  0x21   : > { %1031 = vmatprep.subr.bf16.mxu1 %v1124_v1 }
  0x23   : > { %970 = vmatpush3.bf16.msra.mxu0 %v1090_v29 }
  0x24   : > { %1032 = vmatpush3.bf16.msra.mxu1 %v1091_v30  ;;  %986 = vmatprep.subr.bf16.mxu0 %v1092_v35 }
  0x25   : > { %1037 = vmatprep.subr.bf16.mxu1 %v1124_v1 }
  0x26   : > { %912 = vmatmul.mubr.msk.bf16.vlgmr.msra.gmra.mrb[0].mxu0 %vm1265_vm5, %v911_v37 }
  0x27   : > { %1034 = vmatmul.mubr.msk.bf16.vlgmr.msra.gmra.mrb[0].mxu1 %vm1275_vm6, %v914_v39  ;;  %987 = vmatpush3.bf16.msra.mxu0 %v1093_v38  ;;  %v949_v38 = vld [vmem:[%s1393_s3 + $0x2] ss:$0 sm:$0xff] }
  0x28   : > { %1038 = vmatpush3.bf16.msra.mxu1 %v1094_v40  ;;  %988 = vmatprep.subr.bf16.mxu0 %v1095_v41 }
  0x29   : > { %1039 = vmatprep.subr.bf16.mxu1 %v1124_v1  ;;  %1053 = vmatprep.mubr.msk.bf16.mxu1 %vm1125_vm0, %v1124_v1 }
  0x2b   : > { %989 = vmatpush3.bf16.msra.mxu0 %v1096_v42 }
  0x2c   : > { %1040 = vmatpush3.bf16.msra.mxu1 %v1097_v43  ;;  %990 = vmatprep.subr.bf16.mxu0 %v1098_v44 }
  0x2d   : > { %1041 = vmatprep.subr.bf16.mxu1 %v1124_v1 }
  0x2f   : > { %991 = vmatpush3.bf16.msra.mxu0 %v1099_v45 }
  0x30   : > { %1042 = vmatpush3.bf16.msra.mxu1 %v1100_v46  ;;  %992 = vmatprep.subr.bf16.mxu0 %v1101_v47 }
  0x31   : > { %1043 = vmatprep.subr.bf16.mxu1 %v1124_v1 }
  0x33   : > { %993 = vmatpush3.bf16.msra.mxu0 %v1102_v48 }
  0x34   : > { %1044 = vmatpush3.bf16.msra.mxu1 %v1103_v49  ;;  %994 = vmatprep.subr.bf16.mxu0 %v1104_v50 }
  0x35   : > { %1045 = vmatprep.subr.bf16.mxu1 %v1124_v1 }
  0x37   : > { %995 = vmatpush3.bf16.msra.mxu0 %v1105_v51 }
  0x38   : > { %1046 = vmatpush3.bf16.msra.mxu1 %v1106_v52  ;;  %996 = vmatprep.subr.bf16.mxu0 %v1107_v53 }
  0x39   : > { %1047 = vmatprep.subr.bf16.mxu1 %v1124_v1 }
  0x3b   : > { %997 = vmatpush3.bf16.msra.mxu0 %v1108_v54 }
  0x3c   : > { %1048 = vmatpush3.bf16.msra.mxu1 %v1109_v55  ;;  %998 = vmatprep.subr.bf16.mxu0 %v1110_v56 }
  0x3d   : > { %1049 = vmatprep.subr.bf16.mxu1 %v1124_v1 }
  0x3f   : > { %999 = vmatpush3.bf16.msra.mxu0 %v1111_v57 }
  0x40   : > { %1050 = vmatpush3.bf16.msra.mxu1 %v1112_v58  ;;  %1000 = vmatprep.subr.bf16.mxu0 %v1113_v59 }
  0x41   : > { %1051 = vmatprep.subr.bf16.mxu1 %v1124_v1  ;;  %v916_v1 = vld [vmem:[%s1393_s3] ss:$0 sm:$0xff] }
  0x43   : > { %1001 = vmatpush3.bf16.msra.mxu0 %v1114_v60 }
  0x44   : > { %1052 = vmatpush3.bf16.msra.mxu1 %v1115_v61 }
  0xf9   : > { %v971_v62 = vpop.f32.mrb[0].mxu0 }
  0xfa   : > { %v491_v63 = vpop.f32.mrb[0].mxu1  ;;  %v972_v0 = vpop.f32.mrb[1].mxu0 }
  0xfb   : > { %v973_v2 = vadd.f32 %v972_v0, %v971_v62  ;;  %v1035_v3 = vpop.f32.mrb[1].mxu1  ;;  %v974_v4 = vpop.f32.mrb[2].mxu0 }
  0xfc   : > { %v494_v5 = vpop.f32.mrb[2].mxu1  ;;  %v975_v6 = vpop.f32.mrb[3].mxu0 }
  0xfd   : > { %v492_v7 = vadd.f32 %v973_v2, %v491_v63  ;;  %v976_v8 = vadd.f32 %v975_v6, %v974_v4  ;;  %v1036_v9 = vpop.f32.mrb[3].mxu1 }
  0xff   : > { %v502_v11 = vmul.f32 %v916_v1, %v492_v7  ;;  %v495_v12 = vadd.f32 %v976_v8, %v494_v5 }
 0x101   : > { %v508_v13 = vadd.f32 %v917_v10, %v502_v11  ;;  %v503_v14 = vmul.f32 %v916_v1, %v495_v12 }
 0x103   : > { %v510_v15 = vmax.f32 %v508_v13, 0.0  ;;  %v509_v16 = vadd.f32 %v917_v10, %v503_v14 }
 0x105   : > { %v511_v17 = vmax.f32 %v509_v16, 0.0  ;;  %v514_v18 = vrot.slane %v510_v15, 7  ;;  %v520_v19 = vrot.slane %v510_v15, 1 }
 0x107   : > { %v515_v20 = vrot.slane %v511_v17, 7  ;;  %v521_v21 = vrot.slane %v511_v17, 1  ;;  %v527_v22 = vpack.c.bf16 %v511_v17, %v510_v15 }
 0x109   : > { %753 = vmatprep.mubr.bf16.mxu0 %v527_v22  ;;  %v516_v25 = vsel %vm207_vm1, %v514_v18, %v515_v20  ;;  %v522_v26 = vsel %vm214_vm3, %v520_v19, %v521_v21 }
 0x10a   : > { %v944_v27 = vpack.c.bf16 %v516_v25, %v514_v18  ;;  %v947_v28 = vpack.c.bf16 %v521_v21, %v522_v26 }
 0x10c   : > { %945 = vmatmul.mubr.msk.bf16.vlgmr.msra.gmra.mrb[4].mxu0 %vm1265_vm5, %v944_v27  ;;  %1054 = vmatmul.mubr.msk.bf16.vlgmr.msra.gmra.mrb[4].mxu1 %vm1275_vm6, %v947_v28 }
 0x1df   : > { %v1002_v29 = vpop.f32.mrb[4].mxu0  ;;  %v796_v30 = vpop.f32.mrb[4].mxu1 }
 0x1e0   : > { %v1003_v31 = vpop.f32.mrb[5].mxu0  ;;  %v1055_v32 = vpop.f32.mrb[5].mxu1 }
 0x1e1   : > { %v1004_v34 = vadd.f32 %v1003_v31, %v1002_v29  ;;  %v1005_v35 = vpop.f32.mrb[6].mxu0  ;;  %v799_v37 = vpop.f32.mrb[6].mxu1 }
 0x1e2   : > { %v1006_v39 = vpop.f32.mrb[7].mxu0  ;;  %v1056_v40 = vpop.f32.mrb[7].mxu1 }
 0x1e3   : > { %v797_v41 = vadd.f32 %v1004_v34, %v796_v30  ;;  %v1007_v33 = vadd.f32 %v1006_v39, %v1005_v35 }
 0x1e5   : > { %v807_v42 = vmul.f32 %v949_v38, %v797_v41  ;;  %v800_v43 = vadd.f32 %v1007_v33, %v799_v37 }
 0x1e7   : > { %v813_v44 = vadd.f32 %v950_v36, %v807_v42  ;;  %v808_v45 = vmul.f32 %v949_v38, %v800_v43 }
 0x1e9   : > { %v815_v46 = vadd.f32 %v813_v44, %v1246_v23  ;;  %v814_v47 = vadd.f32 %v950_v36, %v808_v45 }
 0x1eb   : > { %v817_v48 = vmax.f32 %v815_v46, 0.0  ;;  %v816_v49 = vadd.f32 %v814_v47, %v1248_v24 }
 0x1ed   : > { %819 = vst [vmem:[%s197_s8] sm:$0xff] %v817_v48  ;;  %v818_v50 = vmax.f32 %v816_v49, 0.0 }
 0x1ef   : > { %820 = vst [vmem:[%s197_s8 + $0x8] sm:$0xff] %v818_v50 }
 0x1f0 PF: > { %s14_s15 = sadd.s32 1, %s1122_s15  }
 0x1f1   : > { %p11_p4 = scmp.ge.s32.totalorder %s14_s15, 4  }
 0x1f3   :  { %13 = sbr.rel (!%p11_p4) target bundleno = 1 (0x1), region = 66 }

</bundles_post_ra>
